<compile_context>
chip_gen: v7x
topology: tpu7x:2x2x1
jax: 0.10.0
libtpu: 0.0.40
codegen_flags: <defaults>
</compile_context>

<pallas_src>
import functools
import math

import jax
import jax.numpy as jnp
import numpy as np
from jax.experimental import pallas as pl
from jax.experimental.pallas import tpu as pltpu


def _mha_kernel(xq_ref, xf_ref, wq_ref, bq_ref, wk_ref, bk_ref, wv_ref, bv_ref,
                wp_ref, bp_ref, out_ref, *, n_heads, head_size, n_embd):
    """One grid step = one (batch, query-row-tile) pair.

    xq_ref   : (1, tq, C)  query-row tile of x
    xf_ref   : (1, T,  C)  full sequence of x (source of K / V)
    wq/wk/wv : (C, C)      heads packed along output columns
    bq/bk/bv : (1, C)      lane-dense bias rows
    wp       : (C, C)      output projection,  bp: (1, C)
    out_ref  : (1, tq, C)
    """
    xq = xq_ref[0]                                   # (tq, C), native dtype
    xf = xf_ref[0]                                   # (T,  C), native dtype
    inv_scale = 1.0 / math.sqrt(float(n_embd))       # module scales by 1/sqrt(n_embd)

    # Fused, lane-dense projections for ALL heads at once (f32 accumulation).
    q = jnp.dot(xq, wq_ref[...], preferred_element_type=jnp.float32) + bq_ref[0]  # (tq, C)
    k = jnp.dot(xf, wk_ref[...], preferred_element_type=jnp.float32) + bk_ref[0]  # (T,  C)
    v = jnp.dot(xf, wv_ref[...], preferred_element_type=jnp.float32) + bv_ref[0]  # (T,  C)

    tq = xq.shape[0]
    acc = jnp.zeros((tq, n_embd), jnp.float32)       # fused "concat + proj" accumulator
    for h in range(n_heads):                         # static unroll (n_heads is small)
        lo = h * head_size
        hi = lo + head_size
        q_h = q[:, lo:hi]                            # (tq, hs)
        k_h = k[:, lo:hi]                            # (T,  hs)
        v_h = v[:, lo:hi]                            # (T,  hs)

        # scores: contract on the head dim (no explicit transpose needed)
        att = jnp.einsum("qd,kd->qk", q_h, k_h,
                         preferred_element_type=jnp.float32) * inv_scale           # (tq, T)
        att = att - jnp.max(att, axis=-1, keepdims=True)
        p = jnp.exp(att)
        p = p * pl.reciprocal(jnp.sum(p, axis=-1, keepdims=True), approx=True)

        head_out = jnp.dot(p, v_h, preferred_element_type=jnp.float32)             # (tq, hs)
        # Accumulate the output projection per head instead of concatenating:
        # only one (tq, C) accumulator stays live, no lane-axis relayout.
        acc = acc + jnp.dot(head_out, wp_ref[lo:hi, :],
                            preferred_element_type=jnp.float32)                    # (tq, C)

    # TODO(synk): nn.Dropout(0.2) is stochastic in training mode; identity here
    # (eval-mode semantics).
    out_ref[0] = (acc + bp_ref[0]).astype(out_ref.dtype)


def _pick_row_tile(T, tq_max):
    """Largest row tile (multiple of 8, <= tq_max) dividing T, else the full T."""
    for cand in (tq_max, 512, 256, 128, 64, 32, 16, 8):
        if cand <= T and T % cand == 0:
            return cand
    return T


def multi_head_attention(x, params, n_heads, head_size, *, tq_max=256):
    """x: (B, T, C) -> (B, T, C).  Weights packed lane-dense across heads."""
    B, T, C = x.shape
    wq, bq, wk, bk, wv, bv, wp, bp = params
    assert n_heads * head_size == C, "n_heads * head_size must equal n_embd"

    tq = _pick_row_tile(T, tq_max)
    grid = (B, T // tq)

    wfull = lambda b, i: (0, 0)
    kernel = functools.partial(_mha_kernel, n_heads=n_heads,
                               head_size=head_size, n_embd=C)

    # TODO(synk): for long sequences add a KV grid axis (flash-style online softmax)
    # so the (tq, T) score tile and the full-T K/V projections stay bounded in VMEM.
    return pl.pallas_call(
        kernel,
        out_shape=jax.ShapeDtypeStruct((B, T, C), x.dtype),
        grid_spec=pltpu.PrefetchScalarGridSpec(
            num_scalar_prefetch=0,
            grid=grid,
            in_specs=[
                pl.BlockSpec((1, tq, C), lambda b, i: (b, i, 0)),  # x: query-row tile
                pl.BlockSpec((1, T, C), lambda b, i: (b, 0, 0)),   # x: full seq (K/V)
                pl.BlockSpec((C, C), wfull),                       # Wq (heads packed)
                pl.BlockSpec((1, C), wfull),                       # bq
                pl.BlockSpec((C, C), wfull),                       # Wk
                pl.BlockSpec((1, C), wfull),                       # bk
                pl.BlockSpec((C, C), wfull),                       # Wv
                pl.BlockSpec((1, C), wfull),                       # bv
                pl.BlockSpec((C, C), wfull),                       # Wproj
                pl.BlockSpec((1, C), wfull),                       # bproj
            ],
            out_specs=pl.BlockSpec((1, tq, C), lambda b, i: (b, i, 0)),
        ),
        compiler_params=pltpu.CompilerParams(
            dimension_semantics=("parallel", "parallel")),
    )(x, x, wq, bq, wk, bk, wv, bv, wp, bp)


def init_params(key, n_embd):
    """Deterministic nn.Linear-style init, packed lane-dense: W=(C,C), b=(1,C)."""
    ks = jax.random.split(key, 8)
    bound = 1.0 / math.sqrt(n_embd)          # fan_in = n_embd for every linear here
    u = lambda k, shape: jax.random.uniform(k, shape, jnp.float32, -bound, bound)
    wq, bq = u(ks[0], (n_embd, n_embd)), u(ks[1], (1, n_embd))
    wk, bk = u(ks[2], (n_embd, n_embd)), u(ks[3], (1, n_embd))
    wv, bv = u(ks[4], (n_embd, n_embd)), u(ks[5], (1, n_embd))
    wp, bp = u(ks[6], (n_embd, n_embd)), u(ks[7], (1, n_embd))
    return wq, bq, wk, bk, wv, bv, wp, bp


def reference_mha(x, params, n_heads, head_size):
    """Pure-JAX reference mirroring the PyTorch forward (eval mode)."""
    wq, bq, wk, bk, wv, bv, wp, bp = params
    B, T, C = x.shape
    q = x @ wq + bq[0]
    k = x @ wk + bk[0]
    v = x @ wv + bv[0]
    outs = []
    for h in range(n_heads):
        lo, hi = h * head_size, (h + 1) * head_size
        att = q[..., lo:hi] @ jnp.swapaxes(k[..., lo:hi], -1, -2)
        att = att / jnp.sqrt(jnp.float32(C))
        att = jax.nn.softmax(att, axis=-1)
        outs.append(att @ v[..., lo:hi])
    cat = jnp.concatenate(outs, axis=-1)
    return cat @ wp + bp[0]


if __name__ == "__main__":
    # Small shapes consistent with the module (n_embd = n_heads * head_size).
    configs = [
        # (B, T, n_embd, n_heads, head_size, tq_max)
        (2, 8, 32, 4, 8, 256),   # single query tile per batch element
        (2, 16, 32, 4, 8, 8),    # exercises the sequence-tiling path: grid = (2, 2)
    ]
    key = jax.random.PRNGKey(0)
    for (B, T, C, H, hs, tq_max) in configs:
        key, kx, kp = jax.random.split(key, 3)
        x = jax.random.normal(kx, (B, T, C), dtype=jnp.float32)
        params = init_params(kp, C)

        out = jax.block_until_ready(
            multi_head_attention(x, params, H, hs, tq_max=tq_max))
        ref = reference_mha(x, params, H, hs)
        # Tolerance accounts for the EUP approximate reciprocal in the softmax.
        np.testing.assert_allclose(np.asarray(out), np.asarray(ref),
                                   rtol=1e-2, atol=1e-2)

    print("KERNEL_OK")
</pallas_src>

<mosaic_0001>
module attributes {stable_mosaic.version = 11 : i64} {
  func.func @_mha_kernel(%arg0: i32, %arg1: i32, %arg2: memref<1x8x32xf32, #tpu.memory_space<vmem>>, %arg3: memref<1x8x32xf32, #tpu.memory_space<vmem>>, %arg4: memref<32x32xf32, #tpu.memory_space<vmem>>, %arg5: memref<1x32xf32, #tpu.memory_space<vmem>>, %arg6: memref<32x32xf32, #tpu.memory_space<vmem>>, %arg7: memref<1x32xf32, #tpu.memory_space<vmem>>, %arg8: memref<32x32xf32, #tpu.memory_space<vmem>>, %arg9: memref<1x32xf32, #tpu.memory_space<vmem>>, %arg10: memref<32x32xf32, #tpu.memory_space<vmem>>, %arg11: memref<1x32xf32, #tpu.memory_space<vmem>>, %arg12: memref<1x8x32xf32, #tpu.memory_space<vmem>>) attributes {dimension_semantics = [#tpu.dimension_semantics<parallel>, #tpu.dimension_semantics<parallel>], iteration_bounds = array<i64: 2, 1>, scalar_prefetch = 0 : i64, scratch_operands = 0 : i64, tpu.core_type = #tpu.core_type<tc>, window_params = [{transform_indices = @transform_0, window_bounds = array<i64: 1, 8, 32>}, {transform_indices = @transform_1, window_bounds = array<i64: 1, 8, 32>}, {pipeline_mode = #tpu.pipeline_mode<synchronous>, transform_indices = @transform_2, window_bounds = array<i64: 32, 32>}, {pipeline_mode = #tpu.pipeline_mode<synchronous>, transform_indices = @transform_3, window_bounds = array<i64: 1, 32>}, {pipeline_mode = #tpu.pipeline_mode<synchronous>, transform_indices = @transform_4, window_bounds = array<i64: 32, 32>}, {pipeline_mode = #tpu.pipeline_mode<synchronous>, transform_indices = @transform_5, window_bounds = array<i64: 1, 32>}, {pipeline_mode = #tpu.pipeline_mode<synchronous>, transform_indices = @transform_6, window_bounds = array<i64: 32, 32>}, {pipeline_mode = #tpu.pipeline_mode<synchronous>, transform_indices = @transform_7, window_bounds = array<i64: 1, 32>}, {pipeline_mode = #tpu.pipeline_mode<synchronous>, transform_indices = @transform_8, window_bounds = array<i64: 32, 32>}, {pipeline_mode = #tpu.pipeline_mode<synchronous>, transform_indices = @transform_9, window_bounds = array<i64: 1, 32>}, {transform_indices = @transform_10, window_bounds = array<i64: 1, 8, 32>}]} {
    %c0 = arith.constant 0 : index
    %c0_0 = arith.constant 0 : index
    %c0_1 = arith.constant 0 : index
    %0 = vector.load %arg2[%c0, %c0_0, %c0_1] : memref<1x8x32xf32, #tpu.memory_space<vmem>>, vector<1x8x32xf32>
    %1 = vector.shape_cast %0 : vector<1x8x32xf32> to vector<8x32xf32>
    %c0_2 = arith.constant 0 : index
    %c0_3 = arith.constant 0 : index
    %c0_4 = arith.constant 0 : index
    %2 = vector.load %arg3[%c0_2, %c0_3, %c0_4] : memref<1x8x32xf32, #tpu.memory_space<vmem>>, vector<1x8x32xf32>
    %3 = vector.shape_cast %2 : vector<1x8x32xf32> to vector<8x32xf32>
    %c0_5 = arith.constant 0 : index
    %c0_6 = arith.constant 0 : index
    %4 = vector.load %arg4[%c0_5, %c0_6] : memref<32x32xf32, #tpu.memory_space<vmem>>, vector<32x32xf32>
    %cst = arith.constant dense<0.000000e+00> : vector<8x32xf32>
    %5 = tpu.matmul %1, %4, %cst {dimension_numbers = #tpu.dot_dimension_numbers<[1], [0], [0], [1], [0, 0, 1, 1], [], []>} : vector<8x32xf32>, vector<32x32xf32>, vector<8x32xf32> -> vector<8x32xf32>
    %c0_7 = arith.constant 0 : index
    %c0_8 = arith.constant 0 : index
    %6 = vector.load %arg5[%c0_7, %c0_8] : memref<1x32xf32, #tpu.memory_space<vmem>>, vector<1x32xf32>
    %7 = vector.shape_cast %6 : vector<1x32xf32> to vector<32xf32>
    %8 = vector.shape_cast %7 : vector<32xf32> to vector<1x32xf32>
    %9 = vector.broadcast %8 : vector<1x32xf32> to vector<8x32xf32>
    %10 = arith.addf %5, %9 : vector<8x32xf32>
    %c0_9 = arith.constant 0 : index
    %c0_10 = arith.constant 0 : index
    %11 = vector.load %arg6[%c0_9, %c0_10] : memref<32x32xf32, #tpu.memory_space<vmem>>, vector<32x32xf32>
    %cst_11 = arith.constant dense<0.000000e+00> : vector<8x32xf32>
    %12 = tpu.matmul %3, %11, %cst_11 {dimension_numbers = #tpu.dot_dimension_numbers<[1], [0], [0], [1], [0, 0, 1, 1], [], []>} : vector<8x32xf32>, vector<32x32xf32>, vector<8x32xf32> -> vector<8x32xf32>
    %c0_12 = arith.constant 0 : index
    %c0_13 = arith.constant 0 : index
    %13 = vector.load %arg7[%c0_12, %c0_13] : memref<1x32xf32, #tpu.memory_space<vmem>>, vector<1x32xf32>
    %14 = vector.shape_cast %13 : vector<1x32xf32> to vector<32xf32>
    %15 = vector.shape_cast %14 : vector<32xf32> to vector<1x32xf32>
    %16 = vector.broadcast %15 : vector<1x32xf32> to vector<8x32xf32>
    %17 = arith.addf %12, %16 : vector<8x32xf32>
    %c0_14 = arith.constant 0 : index
    %c0_15 = arith.constant 0 : index
    %18 = vector.load %arg8[%c0_14, %c0_15] : memref<32x32xf32, #tpu.memory_space<vmem>>, vector<32x32xf32>
    %cst_16 = arith.constant dense<0.000000e+00> : vector<8x32xf32>
    %19 = tpu.matmul %3, %18, %cst_16 {dimension_numbers = #tpu.dot_dimension_numbers<[1], [0], [0], [1], [0, 0, 1, 1], [], []>} : vector<8x32xf32>, vector<32x32xf32>, vector<8x32xf32> -> vector<8x32xf32>
    %c0_17 = arith.constant 0 : index
    %c0_18 = arith.constant 0 : index
    %20 = vector.load %arg9[%c0_17, %c0_18] : memref<1x32xf32, #tpu.memory_space<vmem>>, vector<1x32xf32>
    %21 = vector.shape_cast %20 : vector<1x32xf32> to vector<32xf32>
    %22 = vector.shape_cast %21 : vector<32xf32> to vector<1x32xf32>
    %23 = vector.broadcast %22 : vector<1x32xf32> to vector<8x32xf32>
    %24 = arith.addf %19, %23 : vector<8x32xf32>
    %cst_19 = arith.constant 0.000000e+00 : f32
    %25 = vector.broadcast %cst_19 : f32 to vector<8x32xf32>
    %26 = vector.extract_strided_slice %10 {offsets = [0, 0], sizes = [8, 8], strides = [1, 1]} : vector<8x32xf32> to vector<8x8xf32>
    %27 = vector.extract_strided_slice %17 {offsets = [0, 0], sizes = [8, 8], strides = [1, 1]} : vector<8x32xf32> to vector<8x8xf32>
    %28 = vector.extract_strided_slice %24 {offsets = [0, 0], sizes = [8, 8], strides = [1, 1]} : vector<8x32xf32> to vector<8x8xf32>
    "tpu.trace_start"() <{level = 10 : i32, message = "qd,kd->qk"}> : () -> ()
    %cst_20 = arith.constant dense<0.000000e+00> : vector<8x8xf32>
    %29 = tpu.matmul %26, %27, %cst_20 {dimension_numbers = #tpu.dot_dimension_numbers<[1], [1], [0], [0], [0, 0, 1, 0], [], []>} : vector<8x8xf32>, vector<8x8xf32>, vector<8x8xf32> -> vector<8x8xf32>
    "tpu.trace_stop"() : () -> ()
    %cst_21 = arith.constant 0.176776692 : f32
    %30 = vector.broadcast %cst_21 : f32 to vector<8x8xf32>
    %31 = arith.mulf %29, %30 : vector<8x8xf32>
    %cst_22 = arith.constant dense<0xFF800000> : vector<8xf32>
    %32 = vector.multi_reduction <maximumf>, %31, %cst_22 [1] : vector<8x8xf32> to vector<8xf32>
    %33 = vector.shape_cast %32 : vector<8xf32> to vector<8x1xf32>
    %34 = vector.broadcast %33 : vector<8x1xf32> to vector<8x8xf32>
    %35 = arith.subf %31, %34 : vector<8x8xf32>
    %36 = math.exp %35 : vector<8x8xf32>
    %cst_23 = arith.constant dense<0.000000e+00> : vector<8xf32>
    %37 = vector.multi_reduction <add>, %36, %cst_23 [1] : vector<8x8xf32> to vector<8xf32>
    %38 = vector.shape_cast %37 : vector<8xf32> to vector<8x1xf32>
    %39 = tpu.reciprocal %38 {approx = true} : vector<8x1xf32> -> vector<8x1xf32>
    %40 = vector.broadcast %39 : vector<8x1xf32> to vector<8x8xf32>
    %41 = arith.mulf %36, %40 : vector<8x8xf32>
    %cst_24 = arith.constant dense<0.000000e+00> : vector<8x8xf32>
    %42 = tpu.matmul %41, %28, %cst_24 {dimension_numbers = #tpu.dot_dimension_numbers<[1], [0], [0], [1], [0, 0, 1, 1], [], []>} : vector<8x8xf32>, vector<8x8xf32>, vector<8x8xf32> -> vector<8x8xf32>
    %c0_25 = arith.constant 0 : index
    %c0_26 = arith.constant 0 : index
    %43 = vector.load %arg10[%c0_25, %c0_26] : memref<32x32xf32, #tpu.memory_space<vmem>>, vector<8x32xf32>
    %cst_27 = arith.constant dense<0.000000e+00> : vector<8x32xf32>
    %44 = tpu.matmul %42, %43, %cst_27 {dimension_numbers = #tpu.dot_dimension_numbers<[1], [0], [0], [1], [0, 0, 1, 1], [], []>} : vector<8x8xf32>, vector<8x32xf32>, vector<8x32xf32> -> vector<8x32xf32>
    %45 = arith.addf %25, %44 : vector<8x32xf32>
    %46 = vector.extract_strided_slice %10 {offsets = [0, 8], sizes = [8, 8], strides = [1, 1]} : vector<8x32xf32> to vector<8x8xf32>
    %47 = vector.extract_strided_slice %17 {offsets = [0, 8], sizes = [8, 8], strides = [1, 1]} : vector<8x32xf32> to vector<8x8xf32>
    %48 = vector.extract_strided_slice %24 {offsets = [0, 8], sizes = [8, 8], strides = [1, 1]} : vector<8x32xf32> to vector<8x8xf32>
    "tpu.trace_start"() <{level = 10 : i32, message = "qd,kd->qk"}> : () -> ()
    %cst_28 = arith.constant dense<0.000000e+00> : vector<8x8xf32>
    %49 = tpu.matmul %46, %47, %cst_28 {dimension_numbers = #tpu.dot_dimension_numbers<[1], [1], [0], [0], [0, 0, 1, 0], [], []>} : vector<8x8xf32>, vector<8x8xf32>, vector<8x8xf32> -> vector<8x8xf32>
    "tpu.trace_stop"() : () -> ()
    %cst_29 = arith.constant 0.176776692 : f32
    %50 = vector.broadcast %cst_29 : f32 to vector<8x8xf32>
    %51 = arith.mulf %49, %50 : vector<8x8xf32>
    %cst_30 = arith.constant dense<0xFF800000> : vector<8xf32>
    %52 = vector.multi_reduction <maximumf>, %51, %cst_30 [1] : vector<8x8xf32> to vector<8xf32>
    %53 = vector.shape_cast %52 : vector<8xf32> to vector<8x1xf32>
    %54 = vector.broadcast %53 : vector<8x1xf32> to vector<8x8xf32>
    %55 = arith.subf %51, %54 : vector<8x8xf32>
    %56 = math.exp %55 : vector<8x8xf32>
    %cst_31 = arith.constant dense<0.000000e+00> : vector<8xf32>
    %57 = vector.multi_reduction <add>, %56, %cst_31 [1] : vector<8x8xf32> to vector<8xf32>
    %58 = vector.shape_cast %57 : vector<8xf32> to vector<8x1xf32>
    %59 = tpu.reciprocal %58 {approx = true} : vector<8x1xf32> -> vector<8x1xf32>
    %60 = vector.broadcast %59 : vector<8x1xf32> to vector<8x8xf32>
    %61 = arith.mulf %56, %60 : vector<8x8xf32>
    %cst_32 = arith.constant dense<0.000000e+00> : vector<8x8xf32>
    %62 = tpu.matmul %61, %48, %cst_32 {dimension_numbers = #tpu.dot_dimension_numbers<[1], [0], [0], [1], [0, 0, 1, 1], [], []>} : vector<8x8xf32>, vector<8x8xf32>, vector<8x8xf32> -> vector<8x8xf32>
    %c8 = arith.constant 8 : index
    %c0_33 = arith.constant 0 : index
    %63 = vector.load %arg10[%c8, %c0_33] : memref<32x32xf32, #tpu.memory_space<vmem>>, vector<8x32xf32>
    %cst_34 = arith.constant dense<0.000000e+00> : vector<8x32xf32>
    %64 = tpu.matmul %62, %63, %cst_34 {dimension_numbers = #tpu.dot_dimension_numbers<[1], [0], [0], [1], [0, 0, 1, 1], [], []>} : vector<8x8xf32>, vector<8x32xf32>, vector<8x32xf32> -> vector<8x32xf32>
    %65 = arith.addf %45, %64 : vector<8x32xf32>
    %66 = vector.extract_strided_slice %10 {offsets = [0, 16], sizes = [8, 8], strides = [1, 1]} : vector<8x32xf32> to vector<8x8xf32>
    %67 = vector.extract_strided_slice %17 {offsets = [0, 16], sizes = [8, 8], strides = [1, 1]} : vector<8x32xf32> to vector<8x8xf32>
    %68 = vector.extract_strided_slice %24 {offsets = [0, 16], sizes = [8, 8], strides = [1, 1]} : vector<8x32xf32> to vector<8x8xf32>
    "tpu.trace_start"() <{level = 10 : i32, message = "qd,kd->qk"}> : () -> ()
    %cst_35 = arith.constant dense<0.000000e+00> : vector<8x8xf32>
    %69 = tpu.matmul %66, %67, %cst_35 {dimension_numbers = #tpu.dot_dimension_numbers<[1], [1], [0], [0], [0, 0, 1, 0], [], []>} : vector<8x8xf32>, vector<8x8xf32>, vector<8x8xf32> -> vector<8x8xf32>
    "tpu.trace_stop"() : () -> ()
    %cst_36 = arith.constant 0.176776692 : f32
    %70 = vector.broadcast %cst_36 : f32 to vector<8x8xf32>
    %71 = arith.mulf %69, %70 : vector<8x8xf32>
    %cst_37 = arith.constant dense<0xFF800000> : vector<8xf32>
    %72 = vector.multi_reduction <maximumf>, %71, %cst_37 [1] : vector<8x8xf32> to vector<8xf32>
    %73 = vector.shape_cast %72 : vector<8xf32> to vector<8x1xf32>
    %74 = vector.broadcast %73 : vector<8x1xf32> to vector<8x8xf32>
    %75 = arith.subf %71, %74 : vector<8x8xf32>
    %76 = math.exp %75 : vector<8x8xf32>
    %cst_38 = arith.constant dense<0.000000e+00> : vector<8xf32>
    %77 = vector.multi_reduction <add>, %76, %cst_38 [1] : vector<8x8xf32> to vector<8xf32>
    %78 = vector.shape_cast %77 : vector<8xf32> to vector<8x1xf32>
    %79 = tpu.reciprocal %78 {approx = true} : vector<8x1xf32> -> vector<8x1xf32>
    %80 = vector.broadcast %79 : vector<8x1xf32> to vector<8x8xf32>
    %81 = arith.mulf %76, %80 : vector<8x8xf32>
    %cst_39 = arith.constant dense<0.000000e+00> : vector<8x8xf32>
    %82 = tpu.matmul %81, %68, %cst_39 {dimension_numbers = #tpu.dot_dimension_numbers<[1], [0], [0], [1], [0, 0, 1, 1], [], []>} : vector<8x8xf32>, vector<8x8xf32>, vector<8x8xf32> -> vector<8x8xf32>
    %c16 = arith.constant 16 : index
    %c0_40 = arith.constant 0 : index
    %83 = vector.load %arg10[%c16, %c0_40] : memref<32x32xf32, #tpu.memory_space<vmem>>, vector<8x32xf32>
    %cst_41 = arith.constant dense<0.000000e+00> : vector<8x32xf32>
    %84 = tpu.matmul %82, %83, %cst_41 {dimension_numbers = #tpu.dot_dimension_numbers<[1], [0], [0], [1], [0, 0, 1, 1], [], []>} : vector<8x8xf32>, vector<8x32xf32>, vector<8x32xf32> -> vector<8x32xf32>
    %85 = arith.addf %65, %84 : vector<8x32xf32>
    %86 = vector.extract_strided_slice %10 {offsets = [0, 24], sizes = [8, 8], strides = [1, 1]} : vector<8x32xf32> to vector<8x8xf32>
    %87 = vector.extract_strided_slice %17 {offsets = [0, 24], sizes = [8, 8], strides = [1, 1]} : vector<8x32xf32> to vector<8x8xf32>
    %88 = vector.extract_strided_slice %24 {offsets = [0, 24], sizes = [8, 8], strides = [1, 1]} : vector<8x32xf32> to vector<8x8xf32>
    "tpu.trace_start"() <{level = 10 : i32, message = "qd,kd->qk"}> : () -> ()
    %cst_42 = arith.constant dense<0.000000e+00> : vector<8x8xf32>
    %89 = tpu.matmul %86, %87, %cst_42 {dimension_numbers = #tpu.dot_dimension_numbers<[1], [1], [0], [0], [0, 0, 1, 0], [], []>} : vector<8x8xf32>, vector<8x8xf32>, vector<8x8xf32> -> vector<8x8xf32>
    "tpu.trace_stop"() : () -> ()
    %cst_43 = arith.constant 0.176776692 : f32
    %90 = vector.broadcast %cst_43 : f32 to vector<8x8xf32>
    %91 = arith.mulf %89, %90 : vector<8x8xf32>
    %cst_44 = arith.constant dense<0xFF800000> : vector<8xf32>
    %92 = vector.multi_reduction <maximumf>, %91, %cst_44 [1] : vector<8x8xf32> to vector<8xf32>
    %93 = vector.shape_cast %92 : vector<8xf32> to vector<8x1xf32>
    %94 = vector.broadcast %93 : vector<8x1xf32> to vector<8x8xf32>
    %95 = arith.subf %91, %94 : vector<8x8xf32>
    %96 = math.exp %95 : vector<8x8xf32>
    %cst_45 = arith.constant dense<0.000000e+00> : vector<8xf32>
    %97 = vector.multi_reduction <add>, %96, %cst_45 [1] : vector<8x8xf32> to vector<8xf32>
    %98 = vector.shape_cast %97 : vector<8xf32> to vector<8x1xf32>
    %99 = tpu.reciprocal %98 {approx = true} : vector<8x1xf32> -> vector<8x1xf32>
    %100 = vector.broadcast %99 : vector<8x1xf32> to vector<8x8xf32>
    %101 = arith.mulf %96, %100 : vector<8x8xf32>
    %cst_46 = arith.constant dense<0.000000e+00> : vector<8x8xf32>
    %102 = tpu.matmul %101, %88, %cst_46 {dimension_numbers = #tpu.dot_dimension_numbers<[1], [0], [0], [1], [0, 0, 1, 1], [], []>} : vector<8x8xf32>, vector<8x8xf32>, vector<8x8xf32> -> vector<8x8xf32>
    %c24 = arith.constant 24 : index
    %c0_47 = arith.constant 0 : index
    %103 = vector.load %arg10[%c24, %c0_47] : memref<32x32xf32, #tpu.memory_space<vmem>>, vector<8x32xf32>
    %cst_48 = arith.constant dense<0.000000e+00> : vector<8x32xf32>
    %104 = tpu.matmul %102, %103, %cst_48 {dimension_numbers = #tpu.dot_dimension_numbers<[1], [0], [0], [1], [0, 0, 1, 1], [], []>} : vector<8x8xf32>, vector<8x32xf32>, vector<8x32xf32> -> vector<8x32xf32>
    %105 = arith.addf %85, %104 : vector<8x32xf32>
    %c0_49 = arith.constant 0 : index
    %c0_50 = arith.constant 0 : index
    %106 = vector.load %arg11[%c0_49, %c0_50] : memref<1x32xf32, #tpu.memory_space<vmem>>, vector<1x32xf32>
    %107 = vector.shape_cast %106 : vector<1x32xf32> to vector<32xf32>
    %108 = vector.shape_cast %107 : vector<32xf32> to vector<1x32xf32>
    %109 = vector.broadcast %108 : vector<1x32xf32> to vector<8x32xf32>
    %110 = arith.addf %105, %109 : vector<8x32xf32>
    %c0_51 = arith.constant 0 : index
    %c0_52 = arith.constant 0 : index
    %c0_53 = arith.constant 0 : index
    %111 = vector.load %arg12[%c0_51, %c0_52, %c0_53] : memref<1x8x32xf32, #tpu.memory_space<vmem>>, vector<1x8x32xf32>
    %112 = vector.shape_cast %111 : vector<1x8x32xf32> to vector<8x32xf32>
    %113 = vector.shape_cast %110 : vector<8x32xf32> to vector<1x8x32xf32>
    tpu.vector_store %arg12[%c0_51, %c0_52, %c0_53], %113 {strides = array<i32>} : memref<1x8x32xf32, #tpu.memory_space<vmem>>, vector<1x8x32xf32>,
    return
  }
  func.func @transform_0(%arg0: i32, %arg1: i32) -> (i32, i32, i32) {
    %c0_i32 = arith.constant 0 : i32
    %c0_i32_0 = arith.constant 0 : i32
    return %arg0, %arg1, %c0_i32 : i32, i32, i32
  }
  func.func @transform_1(%arg0: i32, %arg1: i32) -> (i32, i32, i32) {
    %c0_i32 = arith.constant 0 : i32
    %c0_i32_0 = arith.constant 0 : i32
    %c0_i32_1 = arith.constant 0 : i32
    return %arg0, %c0_i32, %c0_i32_0 : i32, i32, i32
  }
  func.func @transform_2(%arg0: i32, %arg1: i32) -> (i32, i32) {
    %c0_i32 = arith.constant 0 : i32
    %c0_i32_0 = arith.constant 0 : i32
    %c0_i32_1 = arith.constant 0 : i32
    return %c0_i32, %c0_i32_0 : i32, i32
  }
  func.func @transform_3(%arg0: i32, %arg1: i32) -> (i32, i32) {
    %c0_i32 = arith.constant 0 : i32
    %c0_i32_0 = arith.constant 0 : i32
    %c0_i32_1 = arith.constant 0 : i32
    return %c0_i32, %c0_i32_0 : i32, i32
  }
  func.func @transform_4(%arg0: i32, %arg1: i32) -> (i32, i32) {
    %c0_i32 = arith.constant 0 : i32
    %c0_i32_0 = arith.constant 0 : i32
    %c0_i32_1 = arith.constant 0 : i32
    return %c0_i32, %c0_i32_0 : i32, i32
  }
  func.func @transform_5(%arg0: i32, %arg1: i32) -> (i32, i32) {
    %c0_i32 = arith.constant 0 : i32
    %c0_i32_0 = arith.constant 0 : i32
    %c0_i32_1 = arith.constant 0 : i32
    return %c0_i32, %c0_i32_0 : i32, i32
  }
  func.func @transform_6(%arg0: i32, %arg1: i32) -> (i32, i32) {
    %c0_i32 = arith.constant 0 : i32
    %c0_i32_0 = arith.constant 0 : i32
    %c0_i32_1 = arith.constant 0 : i32
    return %c0_i32, %c0_i32_0 : i32, i32
  }
  func.func @transform_7(%arg0: i32, %arg1: i32) -> (i32, i32) {
    %c0_i32 = arith.constant 0 : i32
    %c0_i32_0 = arith.constant 0 : i32
    %c0_i32_1 = arith.constant 0 : i32
    return %c0_i32, %c0_i32_0 : i32, i32
  }
  func.func @transform_8(%arg0: i32, %arg1: i32) -> (i32, i32) {
    %c0_i32 = arith.constant 0 : i32
    %c0_i32_0 = arith.constant 0 : i32
    %c0_i32_1 = arith.constant 0 : i32
    return %c0_i32, %c0_i32_0 : i32, i32
  }
  func.func @transform_9(%arg0: i32, %arg1: i32) -> (i32, i32) {
    %c0_i32 = arith.constant 0 : i32
    %c0_i32_0 = arith.constant 0 : i32
    %c0_i32_1 = arith.constant 0 : i32
    return %c0_i32, %c0_i32_0 : i32, i32
  }
  func.func @transform_10(%arg0: i32, %arg1: i32) -> (i32, i32, i32) {
    %c0_i32 = arith.constant 0 : i32
    %c0_i32_0 = arith.constant 0 : i32
    return %arg0, %arg1, %c0_i32 : i32, i32, i32
  }
}

</mosaic_0001>

<bundles_post_ra>
// kernel: tpu_custom_call.1
= control target key start
LH: loop header
LB: loop body
LE: loop exit
PB: predicated region body
PF: predicated region fallthrough
CT: control target
= control target key end

     0   :  { %s2984_s0 = inlined_call_operand.hbm [shape: f32[2,8,32], index: 0, kind: input, shape index: {}]   ;;  %s2985_s1 = inlined_call_operand.hbm [shape: f32[2,8,32], index: 1, kind: input, shape index: {}]   ;;  %s2986_s2 = inlined_call_operand.hbm [shape: f32[32,32], index: 2, kind: input, shape index: {}]   ;;  %s2987_s3 = inlined_call_operand.vmem [shape: f32[1,32], index: 3, kind: input, shape index: {}]   ;;  %s2988_s4 = inlined_call_operand.hbm [shape: f32[32,32], index: 4, kind: input, shape index: {}]   ;;  %s2989_s5 = inlined_call_operand.vmem [shape: f32[1,32], index: 5, kind: input, shape index: {}]   ;;  %s2990_s6 = inlined_call_operand.hbm [shape: f32[32,32], index: 6, kind: input, shape index: {}]   ;;  %s2991_s7 = inlined_call_operand.vmem [shape: f32[1,32], index: 7, kind: input, shape index: {}]   ;;  %s2992_s8 = inlined_call_operand.hbm [shape: f32[32,32], index: 8, kind: input, shape index: {}]   ;;  %s2993_s9 = inlined_call_operand.vmem [shape: f32[1,32], index: 9, kind: input, shape index: {}]   ;;  %s2994_s10 = inlined_call_operand.hbm [shape: f32[2,8,32], index: 10, kind: output, shape index: {}]  }
   0x1   :  { %3001 = sst [smem:[#allocation22_spill]] %s2986_s2 }
   0x2   :  { %3002 = sst [smem:[#allocation23_spill]] %s2988_s4 }
   0x3   :  { %3003 = sst [smem:[#allocation24_spill]] %s2990_s6 }
   0x4   :  { %3004 = sst [smem:[#allocation25_spill]] %s2991_s7 }
   0x5   :  { %3005 = sst [smem:[#allocation26_spill]] %s2992_s8 }
   0x6   :  { %3006 = sst [smem:[#allocation27_spill]] %s2993_s9 }
   0x7   :  { %3007 = sst [smem:[#allocation28_spill]] %s2994_s10 }
   0x8   :  { %15 = vsyncpa [#allocation3], 0 }
   0x9   :  { %17 = vsyncpa [#allocation3 + $0x1], 0 }
   0xa   :  { %18 = vsyncpa [#allocation6], 0 }
   0xb   :  { %20 = vsyncpa [#allocation6 + $0x1], 0 }
   0xc   :  { %21 = vsyncpa [#allocation9], 0 }
   0xd   :  { %22 = vsyncpa [#allocation12], 0 }
   0xe   :  { %23 = vsyncpa [#allocation4], 0 }
   0xf   :  { %25 = vsyncpa [#allocation4 + $0x1], 0  ;;  %s2534_s13 = smov 0   ;;  %s2536_s14 = smov 0  }
  0x10   :  { %s2538_s15 = smov 0   ;;  %s2540_s16 = smov 0  }
  0x11   :  { %s2542_s17 = smov 0   ;;  %s2544_s18 = smov 0  }
  0x12 LB: > { %3008 = sst [smem:[#allocation20_spill]] %s2454_s16  ;;  %s2565_s19 = sadd.s32 4294967295, %s2462_s18   ;;  %s2462_s18 = sphi %s2544_s18, %s31_s18   ;;  %s2458_s17 = sphi %s2542_s17, %s3043_s17   ;;  %s2454_s16 = sphi %s2540_s16, %s3042_s16   ;;  %s2450_s15 = sphi %s2538_s15, %s3041_s15   ;;  %s2446_s14 = sphi %s2536_s14, %s3040_s14   ;;  %s2442_s13 = sphi %s2534_s13, %s3039_s13  }
  0x13   : > { %p1865_p0 = scmp.ge.s32.totalorder %s2462_s18, 1  ;;  %p2996_p1 = scmp.eq.s32.totalorder %s2565_s19, 0 }
  0x14   : > { %p298_p2 = scmp.lt.s32.totalorder %s2462_s18, 3  ;;  %s2464_s21 = smov [#allocation7]  }
  0x15   : > { %s310_s22 = sshll.u32 %s2464_s21, 4  ;;  %s2465_s24 = smov [#allocation8]   ;;  %s2574_s22 = int_to_ptr.vmem [resolvable:$true] %s310_s22 }
  0x16   : > { %p2570_p3 = pnand %p1865_p0, %p298_p2  ;;  %s326_s25 = sshll.u32 %s2465_s24, 4  ;;  %s2585_s25 = int_to_ptr.vmem [resolvable:$true] %s326_s25 }
  0x17   : > { %s2466_s26 = smov [#allocation10]   ;;  %s3011_s2 = sld [smem:[#allocation22_spill]] }
  0x18   : > { %s3009_s20 = scalar_select %p2570_p3, 1, 0 }
  0x19   : > { %p2082_p4 = pneg %p2570_p3  ;;  %s2587_s27 = sshll.u32 %s2466_s26, 4  ;;  %s343_s27 = int_to_ptr.vmem [resolvable:$true] %s2587_s27 }
  0x1b   : > { %p2581_p6 = pnand %p2082_p4, %p2996_p1 }
  0x1d   : > { %s2192_s30 = scalar_lea.hbm %s3011_s2, 512  ;;  %p2597_p8 = pneg %p2581_p6 }
  0x1e   : > { %p2193_p7 = scmp.ne.s32.totalorder %s3011_s2, %s2192_s30  ;;  %p2199_p11 = scmp.lt.u32.totalorder %s2192_s30, %s3011_s2 }
  0x20   : > { %p2195_p9 = pnand %p2597_p8, %p2193_p7 }
  0x22   : > { %p2196_p10 = pneg %p2195_p9 }
  0x24   : > { %p2201_p12 = pnand %p2199_p11, %p2196_p10 }
  0x26   : > { %2204 = shalt.err (!%p2201_p12)
}
  0x27   : > { %s2205_s28 = scalar_lea.vmem %s2574_s22, 512  ;;  %p2213_p4 = scmp.lt.s32.totalorder %s2574_s22, %s2574_s22 }
  0x28   : > { %p2206_p13 = scmp.ne.s32.totalorder %s2574_s22, %s2205_s28  ;;  %p2214_p5 = scmp.lt.s32.totalorder %s2205_s28, %s2205_s28 }
  0x2a   : > { %p2208_p0 = pnand %p2206_p13, %p2597_p8  ;;  %p2215_p7 = por %p2214_p5, %p2213_p4 }
  0x2c   : > { %p2209_p2 = pneg %p2208_p0 }
  0x2e   : > { %p2216_p9 = pnand %p2215_p7, %p2209_p2 }
  0x30   : > { %2219 = shalt.err (!%p2216_p9)
}
  0x31   : > { %s2467_s29 = smov 128   ;;  %s2468_s30 = smov 8  }
  0x32   : > { %2085 = dma.hbm_to_vmem [thread:$0]  (!%p2581_p6), %s3011_s2, 512, %s2574_s22, [#allocation6], %s2467_s29, %s2467_s29, %s2468_s30  }
  0x33   : > { %s3013_s4 = sld [smem:[#allocation23_spill]] }
  0x39   : > { %s2220_s28 = scalar_lea.hbm %s3013_s4, 512 }
  0x3a   : > { %p2221_p5 = scmp.ne.s32.totalorder %s3013_s4, %s2220_s28  ;;  %p2227_p12 = scmp.lt.u32.totalorder %s2220_s28, %s3013_s4 }
  0x3c   : > { %p2223_p10 = pnand %p2221_p5, %p2597_p8 }
  0x3e   : > { %p2224_p11 = pneg %p2223_p10 }
  0x40   : > { %p2229_p13 = pnand %p2227_p12, %p2224_p11 }
  0x42   : > { %2232 = shalt.err (!%p2229_p13)
}
  0x43   : > { %s2233_s22 = scalar_lea.vmem %s2585_s25, 512  ;;  %p2241_p7 = scmp.lt.s32.totalorder %s2585_s25, %s2585_s25 }
  0x44   : > { %p2234_p0 = scmp.ne.s32.totalorder %s2585_s25, %s2233_s22  ;;  %p2242_p9 = scmp.lt.s32.totalorder %s2233_s22, %s2233_s22 }
  0x46   : > { %p2236_p2 = pnand %p2234_p0, %p2597_p8  ;;  %p2243_p5 = por %p2242_p9, %p2241_p7 }
  0x48   : > { %p2237_p4 = pneg %p2236_p2 }
  0x4a   : > { %p2244_p10 = pnand %p2243_p5, %p2237_p4 }
  0x4c   : > { %2247 = shalt.err (!%p2244_p10)
}
  0x4d   : > { %2088 = dma.hbm_to_vmem [thread:$0]  (!%p2581_p6), %s3013_s4, 512, %s2585_s25, [#allocation9], %s2467_s29, %s2467_s29, %s2468_s30  }
  0x4e   : > { %s3014_s6 = sld [smem:[#allocation24_spill]] }
  0x54   : > { %s2248_s11 = scalar_lea.hbm %s3014_s6, 512 }
  0x55   : > { %p2249_p11 = scmp.ne.s32.totalorder %s3014_s6, %s2248_s11  ;;  %p2255_p0 = scmp.lt.u32.totalorder %s2248_s11, %s3014_s6 }
  0x57   : > { %p2251_p12 = pnand %p2249_p11, %p2597_p8 }
  0x59   : > { %p2252_p13 = pneg %p2251_p12 }
  0x5b   : > { %p2257_p2 = pnand %p2255_p0, %p2252_p13 }
  0x5d   : > { %2260 = shalt.err (!%p2257_p2)
}
  0x5e   : > { %s2261_s22 = scalar_lea.vmem %s343_s27, 512  ;;  %p2269_p5 = scmp.lt.s32.totalorder %s343_s27, %s343_s27 }
  0x5f   : > { %p2262_p4 = scmp.ne.s32.totalorder %s343_s27, %s2261_s22  ;;  %p2270_p10 = scmp.lt.s32.totalorder %s2261_s22, %s2261_s22 }
  0x61   : > { %p2264_p7 = pnand %p2262_p4, %p2597_p8  ;;  %p2271_p1 = por %p2270_p10, %p2269_p5 }
  0x63   : > { %p2265_p9 = pneg %p2264_p7 }
  0x65   : > { %p2272_p3 = pnand %p2271_p1, %p2265_p9 }
  0x67   : > { %2275 = shalt.err (!%p2272_p3)
}
  0x68   : > { %2091 = dma.hbm_to_vmem [thread:$0]  (!%p2581_p6), %s3014_s6, 512, %s343_s27, [#allocation9], %s2467_s29, %s2467_s29, %s2468_s30  }
  0x69   : > { %s2469_s9 = smov [#allocation11]   ;;  %s3015_s8 = sld [smem:[#allocation26_spill]] }
  0x6a   : > { %s358_s10 = sshll.u32 %s2469_s9, 4  ;;  %s359_s10 = int_to_ptr.vmem [resolvable:$true] %s358_s10 }
  0x6f   : > { %s2276_s12 = scalar_lea.hbm %s3015_s8, 512 }
  0x70   : > { %p2277_p1 = scmp.ne.s32.totalorder %s3015_s8, %s2276_s12  ;;  %p2283_p12 = scmp.lt.u32.totalorder %s2276_s12, %s3015_s8 }
  0x72   : > { %p2279_p3 = pnand %p2277_p1, %p2597_p8 }
  0x74   : > { %p2280_p11 = pneg %p2279_p3 }
  0x76   : > { %p2285_p13 = pnand %p2283_p12, %p2280_p11 }
  0x78   : > { %2288 = shalt.err (!%p2285_p13)
}
  0x79   : > { %s2289_s27 = scalar_lea.vmem %s359_s10, 512  ;;  %p2297_p7 = scmp.lt.s32.totalorder %s359_s10, %s359_s10 }
  0x7a   : > { %p2290_p0 = scmp.ne.s32.totalorder %s359_s10, %s2289_s27  ;;  %p2298_p9 = scmp.lt.s32.totalorder %s2289_s27, %s2289_s27 }
  0x7c   : > { %p2292_p2 = pnand %p2290_p0, %p2597_p8  ;;  %p2299_p5 = por %p2298_p9, %p2297_p7 }
  0x7e   : > { %p2293_p4 = pneg %p2292_p2 }
  0x80   : > { %p2300_p10 = pnand %p2299_p5, %p2293_p4 }
  0x82   : > { %2303 = shalt.err (!%p2300_p10)
}
  0x83   : > { %2094 = dma.hbm_to_vmem [thread:$0]  (!%p2581_p6), %s3015_s8, 512, %s359_s10, [#allocation12], %s2467_s29, %s2467_s29, %s2468_s30  }
  0x84   : > { %s1864_s23 = sadd.s32 4294967294, %s2462_s18   ;;  %s43_s21 = sadd.s32 1, %s2458_s17 }
  0x85   : > { %p45_p8 = scmp.ge.s32.totalorder %s43_s21, 2  ;;  %s52_s9 = sadd.s32 1, %s2450_s15 }
  0x86   : > { %p59_p1 = scmp.ne.s32.totalorder %s2450_s15, %s2446_s14  ;;  %p60_p3 = scmp.eq.s32.totalorder %s2462_s18, 0 }
  0x87   : > { %s3045_s21 = smov (%p45_p8, %s43_s21), 0  ;;  %p65_p12 = scmp.ne.s32.totalorder %s2446_s14, %s2442_s13 }
  0x88   : > { %3016 = sst [smem:[#allocation21_spill]] %s3045_s21  ;;  %p2698_p11 = por %p60_p3, %p59_p1 }
  0x89   : > { %s47_s29 = ssub.s32 %s2458_s17, %s3045_s21  ;;  %p285_p6 = scmp.eq.s32.totalorder %s2565_s19, 1 }
  0x8a   : > { %p50_p13 = scmp.eq.s32.totalorder %s47_s29, 0  ;;  %p3018_p0 = scmp.eq.s32.totalorder %s2565_s19, 0 }
  0x8b   : > { %p2713_p4 = por %p285_p6, %p59_p1  ;;  %p291_p7 = scmp.eq.s32.totalorder %s1864_s23, 1 }
  0x8c   : > { %p2709_p2 = por %p3018_p0, %p65_p12  ;;  %p2110_p5 = scmp.lt.s32.totalorder %s2462_s18, 2 }
  0x8d   : > { %s3020_s10 = scalar_select %p2713_p4, 1, 0 }
  0x8e   : > { %s3019_s30 = scalar_select %p2709_p2, 1, 0 }
  0x8f   : > { %s2718_s11 = scalar_select %p50_p13, %s2450_s15, %s52_s9  }
  0x90   : > { %p2720_p9 = por %p291_p7, %p65_p12  ;;  %s375_s24 = sand.u32 1, %s2450_s15  }
  0x91   : > { %s1872_s26 = sshll.u32 %s2458_s17, 7  ;;  %s2727_s28 = sshll.u32 %s375_s24, 3 }
  0x92   : > { %s3021_s12 = scalar_select %p2720_p9, 1, 0 }
  0x93   : > { %s2732_s25 = scalar_lea.hbm %s2984_s0, %s1872_s26  ;;  %s379_s7 = scalar_lea.vmem [#allocation2], %s2727_s28 }
  0x94   : > { %s387_s23 = sshll.u32 %s379_s7, 4  ;;  %p2737_p10 = pnand %p2110_p5, %p2698_p11  ;;  %s2741_s23 = int_to_ptr.vmem [resolvable:$true] %s387_s23 }
  0x95   : > { %s2746_s27 = scalar_lea.hbm %s2985_s1, %s1872_s26  ;;  %s376_s2 = scalar_lea.sflag [#allocation3], %s375_s24 }
  0x96   : > { %s2304_s4 = scalar_lea.hbm %s2732_s25, 128  ;;  %p2306_p1 = pneg %p2737_p10 }
  0x97   : > { %p2305_p8 = scmp.ne.s32.totalorder %s2732_s25, %s2304_s4  ;;  %s2309_s6 = scalar_lea.hbm %s2984_s0, 256 }
  0x98   : > { %p2310_p12 = scmp.lt.u32.totalorder %s2732_s25, %s2984_s0  ;;  %p2311_p6 = scmp.lt.u32.totalorder %s2309_s6, %s2304_s4 }
  0x99   : > { %p2307_p3 = pnand %p2306_p1, %p2305_p8  ;;  %p2313_p0 = scmp.lt.u32.totalorder %s2304_s4, %s2732_s25 }
  0x9a   : > { %p2312_p13 = por %p2311_p6, %p2310_p12 }
  0x9b   : > { %p2308_p11 = pneg %p2307_p3 }
  0x9c   : > { %p2314_p7 = por %p2313_p0, %p2312_p13 }
  0x9e   : > { %p2315_p5 = pnand %p2314_p7, %p2308_p11 }
  0xa0   : > { %2318 = shalt.err (!%p2315_p5)
}
  0xa1   : > { %s2319_s24 = scalar_lea.vmem %s2741_s23, 128  ;;  %s2470_s26 = smov [#allocation2]  }
  0xa2   : > { %p2320_p8 = scmp.ne.s32.totalorder %s2741_s23, %s2319_s24  ;;  %s2324_s29 = sshll.u32 %s2470_s26, 4  ;;  %s2325_s29 = int_to_ptr.vmem [resolvable:$false] %s2324_s29 }
  0xa3   : > { %s2326_s8 = scalar_lea.vmem %s2325_s29, 256  ;;  %p2327_p4 = scmp.lt.s32.totalorder %s2741_s23, %s2325_s29 }
  0xa4   : > { %p2322_p3 = pnand %p2320_p8, %p2306_p1  ;;  %p2328_p12 = scmp.lt.s32.totalorder %s2326_s8, %s2319_s24 }
  0xa6   : > { %p2323_p9 = pneg %p2322_p3  ;;  %p2329_p6 = por %p2328_p12, %p2327_p4 }
  0xa8   : > { %p2330_p13 = pnand %p2329_p6, %p2323_p9 }
  0xaa   : > { %2333 = shalt.err (!%p2330_p13)
}
  0xab   : > { %2098 = dma.hbm_to_vmem [thread:$0]  (!%p2737_p10), %s2732_s25, 128, %s2741_s23, %s376_s2  }
  0xac   : > { %s394_s4 = sand.u32 1, %s2462_s18   ;;  %s398_s6 = scalar_lea.vmem [#allocation5], %s2727_s28 }
  0xad   : > { %s405_s21 = sshll.u32 %s398_s6, 4  ;;  %s395_s22 = scalar_lea.sflag [#allocation6], %s394_s4  ;;  %s406_s21 = int_to_ptr.vmem [resolvable:$true] %s405_s21 }
  0xae   : > { %s2334_s16 = scalar_lea.hbm %s2746_s27, 128  ;;  %s2339_s26 = scalar_lea.hbm %s2985_s1, 256 }
  0xaf   : > { %p2335_p4 = scmp.ne.s32.totalorder %s2746_s27, %s2334_s16  ;;  %p2340_p0 = scmp.lt.u32.totalorder %s2746_s27, %s2985_s1 }
  0xb0   : > { %p2341_p7 = scmp.lt.u32.totalorder %s2339_s26, %s2334_s16  ;;  %p2343_p8 = scmp.lt.u32.totalorder %s2334_s16, %s2746_s27 }
  0xb1   : > { %p2337_p9 = pnand %p2335_p4, %p2306_p1 }
  0xb2   : > { %p2342_p5 = por %p2341_p7, %p2340_p0 }
  0xb3   : > { %p2338_p11 = pneg %p2337_p9 }
  0xb4   : > { %p2344_p3 = por %p2343_p8, %p2342_p5 }
  0xb6   : > { %p2345_p12 = pnand %p2344_p3, %p2338_p11 }
  0xb8   : > { %2348 = shalt.err (!%p2345_p12)
}
  0xb9   : > { %s2349_s2 = scalar_lea.vmem %s406_s21, 128  ;;  %s2471_s28 = smov [#allocation5]  }
  0xba   : > { %p2350_p6 = scmp.ne.s32.totalorder %s406_s21, %s2349_s2  ;;  %s2354_s25 = sshll.u32 %s2471_s28, 4  ;;  %s2355_s25 = int_to_ptr.vmem [resolvable:$false] %s2354_s25 }
  0xbb   : > { %s2356_s23 = scalar_lea.vmem %s2355_s25, 256  ;;  %p2357_p9 = scmp.lt.s32.totalorder %s406_s21, %s2355_s25 }
  0xbc   : > { %p2352_p13 = pnand %p2350_p6, %p2306_p1  ;;  %p2358_p2 = scmp.lt.s32.totalorder %s2356_s23, %s2349_s2 }
  0xbe   : > { %p2353_p4 = pneg %p2352_p13  ;;  %p2359_p0 = por %p2358_p2, %p2357_p9 }
  0xc0   : > { %p2360_p7 = pnand %p2359_p0, %p2353_p4 }
  0xc2   : > { %2363 = shalt.err (!%p2360_p7)
}
  0xc3   : > { %2101 = dma.hbm_to_vmem [thread:$0]  (!%p2737_p10), %s2746_s27, 128, %s406_s21, %s395_s22  }
  0xc4   : > { %p3023_p11 = scmp.ne.s32.totalorder %s3009_s20, 0 }
  0xc5   : > { %s2797_s4 = sand.u32 (!%p3023_p11), 1, %s2446_s14   ;;  %p3024_p2 = scmp.ne.s32.totalorder (!%p3023_p11), %s3019_s30, 0 }
  0xc6   : > { %414 = sbr.rel (%p3023_p11) target bundleno = 2809 (0xaf9), region = 60  ;;  %s2800_s6 = sshll.u32 (!%p3023_p11), %s2797_s4, 3 }
  0xc7   : > { %s417_s16 = scalar_lea.sflag (!%p3023_p11), [#allocation3], %s2797_s4  ;;  %s420_s7 = scalar_lea.vmem (!%p3023_p11), [#allocation2], %s2800_s6 }
  0xcd   : > { %2417 = dma.done.wait (%p3024_p2), %s417_s16, 128  }
  0xce   : > { %2419 = vsyncadd (%p3024_p2), %s417_s16, 4294967168  ;;  %s425_s20 = sand.u32 1, %s2565_s19   ;;  %s429_s27 = scalar_lea.vmem [#allocation5], %s2800_s6 }
  0xcf   : > { %s426_s9 = scalar_lea.sflag [#allocation6], %s425_s20 }
  0xd0   : > { %2421 = dma.done.wait (%p3024_p2), %s426_s9, 128  }
  0xd1   : > { %2423 = vsyncadd (%p3024_p2), %s426_s9, 4294967168  ;;  %p3025_p10 = scmp.eq.s32.totalorder %s2565_s19, 0 }
  0xd3   : > { %2425 = dma.done.wait (%p3025_p10), [#allocation6], 512   ;;  %p3026_p1 = pmov %p3025_p10 }
  0xd5   : > { %2427 = vsyncadd (%p3026_p1), [#allocation6], 4294966784  ;;  %p3027_p5 = pmov %p3026_p1 }
  0xd6   : > { %p3028_p8 = pmov %p3026_p1 }
  0xd7   : > { %2429 = dma.done.wait (%p3027_p5), [#allocation9], 1024  }
  0xd8   : > { %2431 = vsyncadd (%p3028_p8), [#allocation9], 4294966272  ;;  %p3029_p3 = pmov %p3026_p1 }
  0xd9   : > { %p3030_p12 = pmov %p3026_p1 }
  0xda   : > { %2433 = dma.done.wait (%p3029_p3), [#allocation12], 512  }
  0xdb   : > { %2435 = vsyncadd (%p3030_p12), [#allocation12], 4294966784  ;;  %v2472_v0 = vmov 0.0|0.0   ;;  %vm2473_vm0 = vmmov 0   ;;  %v2474_v1 = vmov 0.0   ;;  %v574_v2 = vld [vmem:[#allocation8] sm:$0xff] }
  0xdc   : > { %2048 = vmatprep.subr.bf16.mxu1 %v2472_v0  ;;  %2042 = vmatprep.subr.bf16.mxu0 %v2472_v0  ;;  %v575_v3 = vld [vmem:[#allocation8 + $0x8] sm:$0xff]  ;;  %v489_v4 = vld [vmem:[#allocation7] sm:$0xff]  ;;  %v576_v7 = vld [vmem:[#allocation8 + $0x10] sm:$0xff]  ;;  %vm500_vm1 = vcmask 261120   ;;  %vm739_vm2 = vcmask 64512   ;;  %s2475_s24 = smov 120  }
  0xdd   : > { %1968 = vmatprep.mubr.msk.f32.mxu1 %vm2473_vm0, %v2474_v1  ;;  %1957 = vmatprep.mubr.msk.f32.mxu0 %vm2473_vm0, %v2474_v1  ;;  %v2049_v5 = vpack.c.bf16 %v575_v3, %v574_v2  ;;  %v490_v6 = vld [vmem:[#allocation7 + $0x8] sm:$0xff]  ;;  %v577_v8 = vld [vmem:[#allocation8 + $0x18] sm:$0xff]  ;;  %v491_v10 = vld [vmem:[#allocation7 + $0x10] sm:$0xff]  ;;  %s3031_s8 = sld [smem:[#allocation25_spill]]  ;;  %s2476_s2 = smov 112  }
  0xde   : > { %v2043_v9 = vpack.c.bf16 %v490_v6, %v489_v4  ;;  %v492_v11 = vld [vmem:[#allocation7 + $0x18] sm:$0xff]  ;;  %v2052_v12 = vpack.c.bf16 %v577_v8, %v576_v7  ;;  %v487_v15 = vld [vmem:[%s420_s7] sm:$0xff]  ;;  %v660_v18 = vld [vmem:[#allocation10 + $0x10] sm:$0xff]  ;;  %s2477_s28 = smov 104   ;;  %s3032_s25 = sld [smem:[#allocation20_spill]] }
  0xdf   : > { %2050 = vmatpush3.bf16.msra.mxu1 %v2049_v5  ;;  %v2046_v13 = vpack.c.bf16 %v492_v11, %v491_v10  ;;  %v488_v14 = vld [vmem:[%s429_s27] sm:$0xff]  ;;  %v658_v16 = vld [vmem:[#allocation10] sm:$0xff]  ;;  %v659_v17 = vld [vmem:[#allocation10 + $0x8] sm:$0xff]  ;;  %s3033_s7 = sld [smem:[#allocation27_spill]]  ;;  %s486_s9 = scalar_lea.vmem [#allocation13], %s2800_s6 }
  0xe0   : > { %2044 = vmatpush3.bf16.msra.mxu0 %v2043_v9  ;;  %2051 = vmatprep.subr.bf16.mxu1 %v2472_v0  ;;  %v2055_v19 = vpack.c.bf16 %v659_v17, %v658_v16  ;;  %v661_v20 = vld [vmem:[#allocation10 + $0x18] sm:$0xff]  ;;  %v1885_v22 = vld [vmem:[%s2989_s5] ss:$0 sm:$0xff]  ;;  %v1069_v57 = vld [vmem:[#allocation11 + $0x8] sm:$0xff]  ;;  %s1722_s27 = sshll.u32 %s486_s9, 4  ;;  %s3034_s21 = sld [smem:[#allocation28_spill]]  ;;  %s2936_s27 = int_to_ptr.vmem [resolvable:$true] %s1722_s27 }
  0xe1   : > { %2045 = vmatprep.subr.bf16.mxu0 %v2472_v0  ;;  %v2058_v21 = vpack.c.bf16 %v661_v20, %v660_v18  ;;  %v1883_v23 = vld [vmem:[%s2987_s3] ss:$0 sm:$0xff]  ;;  %s2364_s26 = scalar_lea.vmem %s2936_s27, 128  ;;  %p3035_p13 = scmp.ne.s32.totalorder %s3020_s10, 0 }
  0xe2   : > { %v901_v62 = vld [vmem:[#allocation11] sm:$0xff]  ;;  %p2365_p6 = scmp.ne.s32.totalorder %s2936_s27, %s2364_s26  ;;  %s2478_s6 = smov [#allocation13]  }
  0xe3   : > { %2053 = vmatpush3.bf16.msra.mxu1 %v2052_v12  ;;  %v1887_v30 = vld [vmem:[%s3031_s8] ss:$0 sm:$0xff]  ;;  %s2368_s29 = sshll.u32 %s2478_s6, 4  ;;  %s2369_s29 = int_to_ptr.vmem [resolvable:$false] %s2368_s29 }
  0xe4   : > { %2047 = vmatpush3.bf16.msra.mxu0 %v2046_v13  ;;  %1982 = vmatprep.subr.mxu1 %v2474_v1  ;;  %s1907_s20 = sshll.u32 %s3032_s25, 7  ;;  %p2366_p4 = pnand %p2365_p6, %p3035_p13 }
  0xe5   : > { %2054 = vmatprep.subr.bf16.mxu0 %v2472_v0  ;;  %s2370_s8 = scalar_lea.vmem %s2369_s29, 256  ;;  %p2371_p0 = scmp.lt.s32.totalorder %s2936_s27, %s2369_s29 }
  0xe6   : > { %1969 = vmatmul.mubr.msk.f32.vlgmr.msra.gmra.mrb[0].mxu1 %vm500_vm1, %v488_v14  ;;  %s2934_s22 = scalar_lea.hbm %s3034_s21, %s1907_s20  ;;  %p2367_p9 = pneg %p2366_p4 }
  0xe7   : > { %1958 = vmatmul.mubr.msk.f32.vlgmr.msra.gmra.mrb[0].mxu0 %vm500_vm1, %v487_v15  ;;  %1984 = vmatprep.mubr.msk.f32.mxu1 %vm2473_vm0, %v2474_v1  ;;  %p2372_p7 = scmp.lt.s32.totalorder %s2370_s8, %s2364_s26 }
  0xe8   : > { %1979 = vmatprep.mubr.msk.f32.mxu0 %vm2473_vm0, %v2474_v1  ;;  %2056 = vmatpush3.bf16.msra.mxu0 %v2055_v19 }
  0xe9   : > { %2057 = vmatprep.subr.bf16.mxu0 %v2472_v0  ;;  %p2373_p11 = por %p2372_p7, %p2371_p0 }
  0xeb   : > { %p2374_p2 = pnand %p2373_p11, %p2367_p9 }
  0xec   : > { %2059 = vmatpush3.bf16.msra.mxu0 %v2058_v21 }
  0xed   : > { %1992 = vmatprep.subr.mxu0 %v2474_v1 }
  0xef   : > { %1980 = vmatmul.mubr.msk.f32.vlgmr.msra.gmra.mrb[2].mxu0 %vm500_vm1, %v488_v14 }
  0xf0   : > { %1994 = vmatprep.mubr.msk.f32.mxu0 %vm2473_vm0, %v2474_v1 }
 0x1b9   : > { %v654_v24 = vpop.f32.mrb[0].mxu1 }
 0x1ba   : > { %v655_v25 = vadd.f32 %v1885_v22, %v654_v24  ;;  %v1970_v26 = vpop.f32.mrb[1].mxu1  ;;  %v570_v27 = vpop.f32.mrb[0].mxu0 }
 0x1bb   : > { %v2851_v28 = vadd.f32 %v1883_v23, %v570_v27  ;;  %v1959_v29 = vpop.f32.mrb[1].mxu0  ;;  %v1382_v26 = vld [vmem:[#allocation11 + $0x10] sm:$0xff] }
 0x1bc   : > { %904 = vrot.lane.b32.xlu0 %v655_v25, %s2475_s24  ;;  %1983 = vmatpush3.xpose.msk.msra.mxu1 %vm739_vm2, %v655_v25 }
 0x1bd   : > { %1987 = vmatprep.subr.mxu1 %v2474_v1 }
 0x1bf   : > { %1985 = vmatmul.mubr.msk.f32.vlgmr.msra.gmra.mrb[2].mxu1 %vm739_vm2, %v2851_v28 }
 0x1c0   : > { %902 = vrot.lane.b32.xlu0 %v2851_v28, %s2475_s24  ;;  %1989 = vmatprep.mubr.msk.f32.mxu1 %vm2473_vm0, %v2474_v1 }
 0x1c2   : > { %v735_v31 = vpop.f32.mrb[2].mxu0 }
 0x1c3   : > { %v2865_v32 = vadd.f32 %v1887_v30, %v735_v31  ;;  %v1981_v33 = vpop.f32.mrb[3].mxu0 }
 0x1c5   : > { %1988 = vmatpush3.msra.mxu1 %v2865_v32 }
 0x1c6   : > { %1997 = vmatprep.subr.mxu1 %v2474_v1 }
 0x22e   : > { %v905_v34 = vpop.permute.xlu0 %904 }
 0x22f   : > { %1993 = vmatpush3.xpose.msk.msra.mxu0 %vm739_vm2, %v905_v34 }
 0x230   : > { %2002 = vmatprep.subr.mxu0 %v2474_v1 }
 0x232   : > { %v903_v35 = vpop.permute.xlu0 %902 }
 0x233   : > { %1995 = vmatmul.mubr.msk.f32.vlgmr.msra.gmra.mrb[4].mxu0 %vm739_vm2, %v903_v35 }
 0x234   : > { %2004 = vmatprep.mubr.msk.f32.mxu0 %vm2473_vm0, %v2474_v1  ;;  %2003 = vmatpush3.msra.mxu0 %v1069_v57 }
 0x235   : > { %2012 = vmatprep.subr.mxu0 %v2474_v1 }
 0x292   : > { %v812_v36 = vpop.f32.mrb[2].mxu1 }
 0x293   : > { %v816_v37 = vmul.f32 0.17677669, %v812_v36  ;;  %v1986_v38 = vpop.f32.mrb[3].mxu1 }
 0x295   : > { %v817_v39 = vsel %vm739_vm2, %v816_v37, -inf }
 0x296   : > { %818 = vmax.xlane.f32.xlu1 %v817_v39  ;;  %v1623_v39 = vld [vmem:[#allocation11 + $0x18] sm:$0xff] }
 0x306   : > { %v976_v40 = vpop.f32.mrb[4].mxu0 }
 0x307   : > { %v980_v41 = vmul.f32 0.17677669, %v976_v40  ;;  %v1996_v42 = vpop.f32.mrb[5].mxu0 }
 0x309   : > { %v981_v43 = vsel %vm739_vm2, %v980_v41, -inf }
 0x30a   : > { %982 = vmax.xlane.f32.xlu1 %v981_v43 }
 0x323   : > { %v819_v44 = vpop.xlane.xlu1 %818 }
 0x324   : > { %v820_v45 = vsub.f32 %v816_v37, %v819_v44 }
 0x326   : > { %v821_v46 = vmul.f32 1.442695, %v820_v45 }
 0x328   : > { %2176 = vpow2.f32 %v821_v46 }
 0x332   : > { %v2177_v47 = vpop.eup %2176 }
 0x333   : > { %v823_v48 = vsel %vm739_vm2, %v2177_v47, 0.0 }
 0x334   : > { %824 = vadd.xlane.f32.xlu0 %v823_v48  ;;  %v1905_v48 = vld [vmem:[%s3033_s7] ss:$0 sm:$0xff] }
 0x34a   : > { %1306 = vrot.lane.b32.xlu0 %v2865_v32, %s2476_s2 }
 0x34e   : > { %1459 = vrot.lane.b32.xlu0 %v655_v25, %s2477_s28 }
 0x397   : > { %v983_v49 = vpop.xlane.xlu1 %982 }
 0x398   : > { %v984_v50 = vsub.f32 %v980_v41, %v983_v49 }
 0x39a   : > { %v985_v51 = vmul.f32 1.442695, %v984_v50 }
 0x39c   : > { %2178 = vpow2.f32 %v985_v51 }
 0x3a6   : > { %v2179_v52 = vpop.eup %2178 }
 0x3a7   : > { %v987_v53 = vsel %vm739_vm2, %v2179_v52, 0.0 }
 0x3a8   : > { %988 = vadd.xlane.f32.xlu1 %v987_v53 }
 0x3b9   : > { %993 = vrot.lane.b32.xlu1 %v2865_v32, %s2475_s24  ;;  %s1708_s24 = scalar_lea.sflag [#allocation4], %s2797_s4 }
 0x3bd   : > { %1218 = vrot.lane.b32.xlu1 %v655_v25, %s2476_s2 }
 0x3c1   : > { %v825_v54 = vpop.xlane.xlu0 %824  ;;  %1216 = vrot.lane.b32.xlu1 %v2851_v28, %s2476_s2 }
 0x3c2   : > { %2180 = vrcp.f32 %v825_v54 }
 0x3c5   : > { %v1307_v0 = vpop.permute.xlu0 %1306 }
 0x3c9   : > { %v1460_v21 = vpop.permute.xlu0 %1459 }
 0x3cc   : > { %v2181_v55 = vpop.eup %2180 }
 0x3cd   : > { %v827_v56 = vmul.f32 %v2181_v55, %v2177_v47 }
 0x3cf   : > { %1990 = vmatmul.mubr.msk.f32.vlgmr.msra.gmra.mrb[4].mxu1 %vm739_vm2, %v827_v56 }
 0x3d0   : > { %1999 = vmatprep.mubr.msk.f32.mxu1 %vm2473_vm0, %v2474_v1 }
 0x435   : > { %v989_v58 = vpop.xlane.xlu1 %988 }
 0x436   : > { %2182 = vrcp.f32 %v989_v58 }
 0x439   : > { %v994_v59 = vpop.permute.xlu1 %993 }
 0x43a   : > { %1998 = vmatpush3.msra.mxu1 %v994_v59 }
 0x43b   : > { %2007 = vmatprep.subr.mxu1 %v2474_v1 }
 0x43d   : > { %v1219_v3 = vpop.permute.xlu1 %1218 }
 0x440   : > { %v2183_v60 = vpop.eup %2182 }
 0x441   : > { %v991_v61 = vmul.f32 %v2183_v60, %v2179_v52  ;;  %v1217_v6 = vpop.permute.xlu1 %1216 }
 0x443   : > { %2000 = vmatmul.mubr.msk.f32.vlgmr.msra.gmra.mrb[6].mxu1 %vm739_vm2, %v991_v61 }
 0x444   : > { %2008 = vmatpush3.msra.mxu1 %v901_v62  ;;  %2009 = vmatprep.mubr.msk.f32.mxu1 %vm2473_vm0, %v2474_v1 }
 0x445   : > { %2017 = vmatprep.subr.mxu1 %v2474_v1 }
 0x4a2   : > { %v897_v63 = vpop.f32.mrb[4].mxu1 }
 0x4a3   : > { %v1991_v2 = vpop.f32.mrb[5].mxu1  ;;  %2010 = vmatmul.mubr.msk.f32.vlgmr.msra.gmra.mrb[8].mxu1 %vm739_vm2, %v897_v63 }
 0x4a4   : > { %2018 = vmatpush3.msra.mxu1 %v1307_v0  ;;  %2019 = vmatprep.mubr.msk.f32.mxu1 %vm2473_vm0, %v2474_v1 }
 0x4a5   : > { %2027 = vmatprep.subr.mxu1 %v2474_v1 }
 0x516   : > { %v1065_v4 = vpop.f32.mrb[6].mxu1 }
 0x517   : > { %v2001_v5 = vpop.f32.mrb[7].mxu1  ;;  %2005 = vmatmul.mubr.msk.f32.vlgmr.msra.gmra.mrb[6].mxu0 %vm739_vm2, %v1065_v4 }
 0x518   : > { %2013 = vmatpush3.xpose.msk.msra.mxu0 %vm739_vm2, %v1219_v3  ;;  %2014 = vmatprep.mubr.msk.f32.mxu0 %vm2473_vm0, %v2474_v1 }
 0x519   : > { %2022 = vmatprep.subr.mxu0 %v2474_v1 }
 0x51b   : > { %2015 = vmatmul.mubr.msk.f32.vlgmr.msra.gmra.mrb[8].mxu0 %vm739_vm2, %v1217_v6 }
 0x51c   : > { %2024 = vmatprep.mubr.msk.f32.mxu0 %vm2473_vm0, %v2474_v1  ;;  %2023 = vmatpush3.msra.mxu0 %v1382_v26 }
 0x51d   : > { %2032 = vmatprep.subr.mxu0 %v2474_v1 }
 0x576   : > { %v1212_v7 = vpop.f32.mrb[8].mxu1 }
 0x577   : > { %v2011_v8 = vpop.f32.mrb[9].mxu1 }
 0x5ea   : > { %v1139_v9 = vpop.f32.mrb[6].mxu0 }
 0x5eb   : > { %v1213_v10 = vadd.f32 %v1212_v7, %v1139_v9  ;;  %v2006_v11 = vpop.f32.mrb[7].mxu0 }
 0x5ee   : > { %v1290_v12 = vpop.f32.mrb[8].mxu0 }
 0x5ef   : > { %v1294_v13 = vmul.f32 0.17677669, %v1290_v12  ;;  %v2016_v14 = vpop.f32.mrb[9].mxu0 }
 0x5f1   : > { %v1295_v15 = vsel %vm739_vm2, %v1294_v13, -inf }
 0x5f2   : > { %1296 = vmax.xlane.f32.xlu1 %v1295_v15 }
 0x67f   : > { %v1297_v16 = vpop.xlane.xlu1 %1296 }
 0x680   : > { %v1298_v17 = vsub.f32 %v1294_v13, %v1297_v16 }
 0x682   : > { %v1299_v18 = vmul.f32 1.442695, %v1298_v17 }
 0x684   : > { %2184 = vpow2.f32 %v1299_v18 }
 0x68e   : > { %v2185_v19 = vpop.eup %2184 }
 0x68f   : > { %v1301_v20 = vsel %vm739_vm2, %v2185_v19, 0.0 }
 0x690   : > { %1302 = vadd.xlane.f32.xlu0 %v1301_v20 }
 0x6a6   : > { %1457 = vrot.lane.b32.xlu0 %v2851_v28, %s2477_s28 }
 0x71d   : > { %v1303_v22 = vpop.xlane.xlu0 %1302 }
 0x71e   : > { %2186 = vrcp.f32 %v1303_v22 }
 0x721   : > { %v1458_v25 = vpop.permute.xlu0 %1457 }
 0x728   : > { %v2187_v23 = vpop.eup %2186 }
 0x729   : > { %v1305_v24 = vmul.f32 %v2187_v23, %v2185_v19 }
 0x72b   : > { %2020 = vmatmul.mubr.msk.f32.vlgmr.msra.gmra.mrb[10].mxu1 %vm739_vm2, %v1305_v24 }
 0x72c   : > { %2028 = vmatpush3.xpose.msk.msra.mxu1 %vm739_vm2, %v1460_v21  ;;  %2029 = vmatprep.mubr.msk.f32.mxu1 %vm2473_vm0, %v2474_v1 }
 0x72d   : > { %2037 = vmatprep.subr.mxu1 %v2474_v1 }
 0x72f   : > { %2030 = vmatmul.mubr.msk.f32.vlgmr.msra.gmra.mrb[12].mxu1 %vm739_vm2, %v1458_v25 }
 0x730   : > { %2039 = vmatprep.mubr.msk.f32.mxu1 %vm2473_vm0, %v2474_v1  ;;  %2038 = vmatpush3.msra.mxu1 %v1623_v39 }
 0x7fe   : > { %v1378_v27 = vpop.f32.mrb[10].mxu1 }
 0x7ff   : > { %v2021_v28 = vpop.f32.mrb[11].mxu1  ;;  %2025 = vmatmul.mubr.msk.f32.vlgmr.msra.gmra.mrb[10].mxu0 %vm739_vm2, %v1378_v27 }
 0x800   : > { %2034 = vmatprep.mubr.msk.f32.mxu0 %vm2473_vm0, %v2474_v1 }
 0x802   : > { %v1531_v29 = vpop.f32.mrb[12].mxu1 }
 0x803   : > { %v1535_v30 = vmul.f32 0.17677669, %v1531_v29  ;;  %v2031_v31 = vpop.f32.mrb[13].mxu1 }
 0x805   : > { %v1536_v33 = vsel %vm739_vm2, %v1535_v30, -inf }
 0x806   : > { %1537 = vmax.xlane.f32.xlu0 %v1536_v33 }
 0x893   : > { %v1538_v34 = vpop.xlane.xlu0 %1537 }
 0x894   : > { %v1539_v35 = vsub.f32 %v1535_v30, %v1538_v34 }
 0x896   : > { %v1540_v36 = vmul.f32 1.442695, %v1539_v35 }
 0x898   : > { %2188 = vpow2.f32 %v1540_v36 }
 0x8a2   : > { %v2189_v37 = vpop.eup %2188 }
 0x8a3   : > { %v1542_v38 = vsel %vm739_vm2, %v2189_v37, 0.0 }
 0x8a4   : > { %1543 = vadd.xlane.f32.xlu1 %v1542_v38 }
 0x8b5   : > { %1547 = vrot.lane.b32.xlu1 %v2865_v32, %s2477_s28 }
 0x8d2   : > { %v1452_v1 = vpop.f32.mrb[10].mxu0 }
 0x8d3   : > { %v1456_v40 = vadd.f32 %v1452_v1, %v1213_v10  ;;  %v2026_v41 = vpop.f32.mrb[11].mxu0 }
 0x931   : > { %v1544_v42 = vpop.xlane.xlu1 %1543 }
 0x932   : > { %2190 = vrcp.f32 %v1544_v42 }
 0x935   : > { %v1548_v43 = vpop.permute.xlu1 %1547 }
 0x936   : > { %2033 = vmatpush3.msra.mxu0 %v1548_v43 }
 0x93c   : > { %v2191_v44 = vpop.eup %2190 }
 0x93d   : > { %v1546_v45 = vmul.f32 %v2191_v44, %v2189_v37 }
 0x93f   : > { %2035 = vmatmul.mubr.msk.f32.vlgmr.msra.gmra.mrb[12].mxu0 %vm739_vm2, %v1546_v45 }
 0xa12   : > { %v1619_v46 = vpop.f32.mrb[12].mxu0 }
 0xa13   : > { %v2036_v47 = vpop.f32.mrb[13].mxu0  ;;  %2040 = vmatmul.mubr.msk.f32.vlgmr.msra.gmra.mrb[14].mxu1 %vm739_vm2, %v1619_v46 }
 0xae6   : > { %v1693_v32 = vpop.f32.mrb[14].mxu1 }
 0xae7   : > { %v1697_v49 = vadd.f32 %v1693_v32, %v1456_v40  ;;  %v2041_v50 = vpop.f32.mrb[15].mxu1 }
 0xae9   : > { %v1705_v51 = vadd.f32 %v1905_v48, %v1697_v49 }
 0xaeb   : > { %1706 = vst.msk [vmem:[%s486_s9] sm:$0xff] %vm500_vm1, %v1705_v51 }
 0xaec   : > { %2377 = shalt.err (!%p2374_p2)
}
 0xaed   : > { %s2378_s4 = scalar_lea.hbm %s2934_s22, 128  ;;  %s2382_s25 = scalar_lea.hbm %s3034_s21, 256 }
 0xaee   : > { %p2379_p10 = scmp.ne.s32.totalorder %s2934_s22, %s2378_s4  ;;  %p2383_p8 = scmp.lt.u32.totalorder %s2934_s22, %s3034_s21 }
 0xaef   : > { %p2384_p3 = scmp.lt.u32.totalorder %s2382_s25, %s2378_s4  ;;  %p2386_p6 = scmp.lt.u32.totalorder %s2378_s4, %s2934_s22 }
 0xaf0   : > { %p2380_p1 = pnand %p2379_p10, %p3035_p13 }
 0xaf1   : > { %p2385_p12 = por %p2384_p3, %p2383_p8 }
 0xaf2   : > { %p2381_p5 = pneg %p2380_p1 }
 0xaf3   : > { %p2387_p4 = por %p2386_p6, %p2385_p12 }
 0xaf5   : > { %p2388_p9 = pnand %p2387_p4, %p2381_p5 }
 0xaf7   : > { %2391 = shalt.err (!%p2388_p9)
}
 0xaf8   : > { %2080 = dma.vmem_to_hbm [thread:$0]  (%p3035_p13), %s2936_s27, 128, %s2934_s22, %s1708_s24  }
 0xaf9 PF: > { %s1734_s7 = sand.u32 1, %s2442_s13   ;;  %p3036_p0 = scmp.ne.s32.totalorder %s3021_s12, 0 }
 0xafa   : > { %p3037_p7 = scmp.ge.s32.totalorder %s2462_s18, 2  ;;  %s1735_s20 = scalar_lea.sflag [#allocation4], %s1734_s7 }
 0xafc   : > { %p2103_p11 = pnand %p3037_p7, %p3036_p0 }
 0xafe   : > { %2437 = dma.done.wait (!%p2103_p11), %s1735_s20, 128  }
 0xaff   : > { %2439 = vsyncadd (!%p2103_p11), %s1735_s20, 4294967168  ;;  %s31_s18 = sadd.s32 1, %s2462_s18   ;;  %s3038_s10 = sld [smem:[#allocation21_spill]] }
 0xb00   : > { %p28_p2 = scmp.ge.s32.totalorder %s31_s18, 4   ;;  %s3039_s13 = smov %s2446_s14 }
 0xb01   : > { %s3040_s14 = smov %s2450_s15  ;;  %s3041_s15 = smov %s2718_s11 }
 0xb02   : > { %s3042_s16 = smov %s2458_s17  ;;  %30 = sbr.rel (!%p28_p2) target bundleno = 18 (0x12), region = 134 }
 0xb05   : > { %s3043_s17 = smov %s3038_s10 }
 0xb09   :  { %1740 = vsyncpa [#allocation3], 1 }
 0xb0a   :  { %1742 = vsyncpa [#allocation3 + $0x1], 1 }
 0xb0b   :  { %1743 = vsyncpa [#allocation6], 1 }
 0xb0c   :  { %1745 = vsyncpa [#allocation6 + $0x1], 1 }
 0xb0d   :  { %1746 = vsyncpa [#allocation9], 1 }
 0xb0e   :  { %1747 = vsyncpa [#allocation12], 1 }
 0xb0f   :  { %1748 = vsyncpa [#allocation4], 1 }
 0xb10   :  { %1750 = vsyncpa [#allocation4 + $0x1], 1 }

</bundles_post_ra>
